<compile_context>
chip_gen: v7x
topology: tpu7x:2x2x1
jax: 0.10.0
libtpu: 0.0.40
codegen_flags: <defaults>
</compile_context>

<pallas_src>
import functools

import jax
import jax.numpy as jnp
from jax.experimental import pallas as pl
from jax.experimental.pallas import tpu as pltpu

IGNORE_INDEX = -100


def _ce_loss_kernel(logits_ref, tgt_ref, o_ref, sum_ref, cnt_ref, *,
                    ignore_index, n_rows, tiles_per_shard):
    c = pl.program_id(0)   # shard (parallel axis, one per TensorCore on v7x)
    t = pl.program_id(1)   # row-tile within shard (arbitrary / reduction axis)

    @pl.when(t == 0)
    def _():
        sum_ref[...] = jnp.zeros_like(sum_ref)
        cnt_ref[...] = jnp.zeros_like(cnt_ref)

    x = logits_ref[...].astype(jnp.float32)   # (TN, V): cast per-tile, HBM stays native dtype
    tgt = tgt_ref[...]                        # (TN, 1) int32
    tn, v = x.shape

    # Global row index of each sublane in this tile.  Rows >= n_rows belong to
    # a ragged / out-of-range tile: their logits may be stale VMEM and their
    # targets are padding, so they are masked out here (not via target value).
    tile_idx = c * tiles_per_shard + t
    rows = tile_idx * tn + jax.lax.broadcasted_iota(jnp.int32, (tn, 1), 0)
    valid = (tgt != ignore_index) & (rows < n_rows)            # (TN, 1) bool

    # Fused, numerically-stable cross entropy.  Reuse `shifted` for both the
    # logsumexp and the target gather; the row max cancels in the difference.
    m = jnp.max(x, axis=-1, keepdims=True)                     # (TN, 1)  XLU reduce
    shifted = x - m                                            # (TN, V)  VPU
    sumexp = jnp.sum(jnp.exp(shifted), axis=-1, keepdims=True)  # EUP exp + XLU reduce

    vocab_ids = jax.lax.broadcasted_iota(jnp.int32, (tn, v), 1)
    tgt_shift = jnp.sum(jnp.where(vocab_ids == tgt, shifted, 0.0),
                        axis=-1, keepdims=True)                # (TN, 1) one-hot gather

    # loss = (m + log(sumexp)) - (m + tgt_shift) = log(sumexp) - tgt_shift
    # `where` (not multiply-by-mask) so inf/nan from garbage rows is discarded.
    row_loss = jnp.where(valid, jnp.log(sumexp) - tgt_shift, 0.0)

    sum_ref[...] += jnp.sum(row_loss, axis=0, keepdims=True)
    cnt_ref[...] += jnp.sum(valid.astype(jnp.float32), axis=0, keepdims=True)

    # Last tile of this shard: emit the per-shard partial (sum, count) into a
    # lane-dense (8, 128) output slab -> single unmasked vector store.
    @pl.when(t == pl.num_programs(1) - 1)
    def _():
        lane = jax.lax.broadcasted_iota(jnp.int32, (8, 128), 1)
        sub = jax.lax.broadcasted_iota(jnp.int32, (8, 128), 0)
        o_ref[...] = jnp.where((sub == 0) & (lane == 0), sum_ref[0, 0],
                     jnp.where((sub == 0) & (lane == 1), cnt_ref[0, 0], 0.0))


def gpt2_loss(logits, target_ids, *, ignore_index=IGNORE_INDEX,
              block_rows=None, num_shards=2):
    """Cross-entropy matching nn.CrossEntropyLoss(ignore_index=-100) on
    logits (B, S, V) and target_ids (B, S). Mean over non-ignored tokens
    (0/0 -> NaN when every token is ignored, matching torch)."""
    b, s, v = logits.shape
    n = b * s

    # Keep logits in their native dtype (bf16 for real GPT-2) -> half the DMA
    # bytes and no full-tensor HBM copy from a wrapper cast.
    logits2 = logits.reshape(n, v)
    tgt = target_ids.reshape(n).astype(jnp.int32)

    # --- pick a row-tile size: ~2 MiB logits tiles, sublane-packing aligned ---
    itemsize = jnp.dtype(logits.dtype).itemsize
    mult = 8 if itemsize >= 4 else (16 if itemsize == 2 else 32)
    if block_rows is None:
        target_bytes = 2 << 20
        br = (target_bytes // max(1, v * itemsize)) // mult * mult
        br = max(mult, min(br, 1024))
    else:
        br = max(mult, (block_rows // mult) * mult)
    br = min(br, pl.cdiv(n, mult) * mult)   # no taller than (rounded-up) N
    block_rows = br

    n_tiles = pl.cdiv(n, block_rows)
    num_shards = max(1, min(num_shards, n_tiles))
    tiles_per_shard = pl.cdiv(n_tiles, num_shards)
    n_pad_rows = num_shards * tiles_per_shard * block_rows

    # Pad ONLY the tiny target vector (logits are never padded / copied).
    if n_pad_rows > n:
        tgt = jnp.pad(tgt, (0, n_pad_rows - n), constant_values=ignore_index)
    tgt2 = tgt.reshape(n_pad_rows, 1)

    max_blk = n_tiles - 1  # clamp so fully-out-of-range tiles re-read a real tile

    kernel = functools.partial(
        _ce_loss_kernel,
        ignore_index=ignore_index,
        n_rows=n,
        tiles_per_shard=tiles_per_shard,
    )

    out = pl.pallas_call(
        kernel,
        out_shape=jax.ShapeDtypeStruct((num_shards * 8, 128), jnp.float32),
        grid_spec=pltpu.PrefetchScalarGridSpec(
            num_scalar_prefetch=0,
            grid=(num_shards, tiles_per_shard),
            in_specs=[
                pl.BlockSpec(
                    (block_rows, v),
                    lambda c, t: (jnp.minimum(c * tiles_per_shard + t, max_blk), 0)),
                pl.BlockSpec(
                    (block_rows, 1),
                    lambda c, t: (c * tiles_per_shard + t, 0)),
            ],
            out_specs=pl.BlockSpec((8, 128), lambda c, t: (c, 0)),
            scratch_shapes=[
                pltpu.VMEM((1, 1), jnp.float32),  # running loss sum (per shard)
                pltpu.VMEM((1, 1), jnp.float32),  # running valid-token count
            ],
        ),
        compiler_params=pltpu.CompilerParams(
            dimension_semantics=("parallel", "arbitrary"),
            vmem_limit_bytes=48 << 20,  # fits v7x 64 MiB, lifts v5e 16 MiB default
        ),
    )(logits2, tgt2)

    partials = out.reshape(num_shards, 8, 128)
    total_sum = jnp.sum(partials[:, 0, 0])
    total_cnt = jnp.sum(partials[:, 0, 1])
    return total_sum / total_cnt
    # TODO(synk): for real GPT-2 (V=50257), pad the vocab axis to 50304 upstream
    # (padding logits at a large negative value) for fully lane-aligned tiles.


def _reference_loss(logits, target_ids, ignore_index=IGNORE_INDEX):
    b, s, v = logits.shape
    lg = logits.reshape(-1, v).astype(jnp.float32)
    tg = target_ids.reshape(-1)
    valid = tg != ignore_index
    lse = jax.nn.logsumexp(lg, axis=-1)
    safe_tg = jnp.where(valid, tg, 0)
    tgt_logit = jnp.take_along_axis(lg, safe_tg[:, None], axis=-1)[:, 0]
    per_row = jnp.where(valid, lse - tgt_logit, 0.0)
    return jnp.sum(per_row) / jnp.sum(valid.astype(jnp.float32))


if __name__ == "__main__":
    key = jax.random.PRNGKey(0)

    # --- test 1: small GPT2-like shapes, f32, single tile / single shard ---
    B, S, V = 2, 8, 128
    k1, k2, k3, k4, k5, k6 = jax.random.split(key, 6)
    logits = jax.random.normal(k1, (B, S, V), dtype=jnp.float32)
    target_ids = jax.random.randint(k2, (B, S), 0, V, dtype=jnp.int32)
    ignore_mask = jax.random.bernoulli(k3, p=0.25, shape=(B, S))
    target_ids = jnp.where(ignore_mask, jnp.int32(IGNORE_INDEX), target_ids)

    loss = jax.block_until_ready(gpt2_loss(logits, target_ids))
    ref = jax.block_until_ready(_reference_loss(logits, target_ids))
    assert jnp.allclose(loss, ref, rtol=1e-4, atol=1e-4), (loss, ref)

    # --- test 2: bf16 logits, ragged last tile, 2 shards (exercises v7x path) ---
    B2, S2, V2 = 2, 13, 256   # N = 26 rows -> 2 tiles of 16 rows, last one ragged
    logits2 = jax.random.normal(k4, (B2, S2, V2), dtype=jnp.float32).astype(jnp.bfloat16)
    target_ids2 = jax.random.randint(k5, (B2, S2), 0, V2, dtype=jnp.int32)
    ignore_mask2 = jax.random.bernoulli(k6, p=0.2, shape=(B2, S2))
    target_ids2 = jnp.where(ignore_mask2, jnp.int32(IGNORE_INDEX), target_ids2)

    loss2 = jax.block_until_ready(
        gpt2_loss(logits2, target_ids2, block_rows=16, num_shards=2))
    ref2 = jax.block_until_ready(_reference_loss(logits2, target_ids2))
    assert jnp.allclose(loss2, ref2, rtol=1e-4, atol=1e-4), (loss2, ref2)

    print("KERNEL_OK")
</pallas_src>

<mosaic_0001>
module attributes {stable_mosaic.version = 11 : i64} {
  func.func @_ce_loss_kernel(%arg0: i32, %arg1: i32, %arg2: memref<16x128xf32, #tpu.memory_space<vmem>>, %arg3: memref<16x1xi32, #tpu.memory_space<vmem>>, %arg4: memref<8x128xf32, #tpu.memory_space<vmem>>, %arg5: memref<1x1xf32, #tpu.memory_space<vmem>>, %arg6: memref<1x1xf32, #tpu.memory_space<vmem>>) attributes {dimension_semantics = [#tpu.dimension_semantics<parallel>, #tpu.dimension_semantics<arbitrary>], iteration_bounds = array<i64: 1, 1>, scalar_prefetch = 0 : i64, scratch_operands = 2 : i64, tpu.core_type = #tpu.core_type<tc>, window_params = [{transform_indices = @transform_0, window_bounds = array<i64: 16, 128>}, {transform_indices = @transform_1, window_bounds = array<i64: 16, 1>}, {transform_indices = @transform_2, window_bounds = array<i64: 8, 128>}]} {
    %c0_i32 = arith.constant 0 : i32
    %0 = arith.cmpi eq, %arg1, %c0_i32 : i32
    %1 = arith.extui %0 : i1 to i32
    %c0_i32_0 = arith.constant 0 : i32
    %2 = arith.cmpi ne, %1, %c0_i32_0 : i32
    scf.if %2 {
      %cst_21 = arith.constant 0.000000e+00 : f32
      %49 = vector.broadcast %cst_21 : f32 to vector<1x1xf32>
      %c0_22 = arith.constant 0 : index
      %c0_23 = arith.constant 0 : index
      %50 = vector.load %arg5[%c0_22, %c0_23] : memref<1x1xf32, #tpu.memory_space<vmem>>, vector<1x1xf32>
      tpu.vector_store %arg5[%c0_22, %c0_23], %49 {strides = array<i32>} : memref<1x1xf32, #tpu.memory_space<vmem>>, vector<1x1xf32>,
      %cst_24 = arith.constant 0.000000e+00 : f32
      %51 = vector.broadcast %cst_24 : f32 to vector<1x1xf32>
      %c0_25 = arith.constant 0 : index
      %c0_26 = arith.constant 0 : index
      %52 = vector.load %arg6[%c0_25, %c0_26] : memref<1x1xf32, #tpu.memory_space<vmem>>, vector<1x1xf32>
      tpu.vector_store %arg6[%c0_25, %c0_26], %51 {strides = array<i32>} : memref<1x1xf32, #tpu.memory_space<vmem>>, vector<1x1xf32>,
    } else {
    }
    %c0 = arith.constant 0 : index
    %c0_1 = arith.constant 0 : index
    %3 = vector.load %arg2[%c0, %c0_1] : memref<16x128xf32, #tpu.memory_space<vmem>>, vector<16x128xf32>
    %c0_2 = arith.constant 0 : index
    %c0_3 = arith.constant 0 : index
    %4 = vector.load %arg3[%c0_2, %c0_3] : memref<16x1xi32, #tpu.memory_space<vmem>>, vector<16x1xi32>
    %c1_i32 = arith.constant 1 : i32
    %5 = arith.muli %arg0, %c1_i32 : i32
    %6 = arith.addi %5, %arg1 : i32
    %c16_i32 = arith.constant 16 : i32
    %7 = arith.muli %6, %c16_i32 : i32
    %8 = tpu.iota {dimensions = array<i32: 0>} : vector<16x1xi32>
    %9 = vector.broadcast %7 : i32 to vector<16x1xi32>
    %10 = arith.addi %9, %8 : vector<16x1xi32>
    %c-100_i32 = arith.constant -100 : i32
    %11 = vector.broadcast %c-100_i32 : i32 to vector<16x1xi32>
    %12 = arith.cmpi ne, %4, %11 : vector<16x1xi32>
    %c16_i32_4 = arith.constant 16 : i32
    %13 = vector.broadcast %c16_i32_4 : i32 to vector<16x1xi32>
    %14 = arith.cmpi slt, %10, %13 : vector<16x1xi32>
    %15 = arith.andi %12, %14 : vector<16x1xi1>
    %cst = arith.constant dense<0xFF800000> : vector<16xf32>
    %16 = vector.multi_reduction <maximumf>, %3, %cst [1] : vector<16x128xf32> to vector<16xf32>
    %17 = vector.shape_cast %16 : vector<16xf32> to vector<16x1xf32>
    %18 = vector.broadcast %17 : vector<16x1xf32> to vector<16x128xf32>
    %19 = arith.subf %3, %18 : vector<16x128xf32>
    %20 = math.exp %19 : vector<16x128xf32>
    %cst_5 = arith.constant dense<0.000000e+00> : vector<16xf32>
    %21 = vector.multi_reduction <add>, %20, %cst_5 [1] : vector<16x128xf32> to vector<16xf32>
    %22 = vector.shape_cast %21 : vector<16xf32> to vector<16x1xf32>
    %23 = tpu.iota {dimensions = array<i32: 1>} : vector<16x128xi32>
    %24 = vector.broadcast %4 : vector<16x1xi32> to vector<16x128xi32>
    %25 = arith.cmpi eq, %23, %24 : vector<16x128xi32>
    %cst_6 = arith.constant 0.000000e+00 : f32
    %26 = vector.broadcast %cst_6 : f32 to vector<16x128xf32>
    %27 = arith.select %25, %19, %26 : vector<16x128xi1>, vector<16x128xf32>
    %cst_7 = arith.constant dense<0.000000e+00> : vector<16xf32>
    %28 = vector.multi_reduction <add>, %27, %cst_7 [1] : vector<16x128xf32> to vector<16xf32>
    %29 = vector.shape_cast %28 : vector<16xf32> to vector<16x1xf32>
    %30 = math.log %22 : vector<16x1xf32>
    %31 = arith.subf %30, %29 : vector<16x1xf32>
    %cst_8 = arith.constant 0.000000e+00 : f32
    %32 = vector.broadcast %cst_8 : f32 to vector<16x1xf32>
    %33 = arith.select %15, %31, %32 : vector<16x1xi1>, vector<16x1xf32>
    %c0_9 = arith.constant 0 : index
    %c0_10 = arith.constant 0 : index
    %34 = vector.load %arg5[%c0_9, %c0_10] : memref<1x1xf32, #tpu.memory_space<vmem>>, vector<1x1xf32>
    %cst_11 = arith.constant dense<0.000000e+00> : vector<1xf32>
    %35 = vector.multi_reduction <add>, %33, %cst_11 [0] : vector<16x1xf32> to vector<1xf32>
    %36 = vector.shape_cast %35 : vector<1xf32> to vector<1x1xf32>
    %37 = arith.addf %34, %36 : vector<1x1xf32>
    %c0_12 = arith.constant 0 : index
    %c0_13 = arith.constant 0 : index
    %38 = vector.load %arg5[%c0_12, %c0_13] : memref<1x1xf32, #tpu.memory_space<vmem>>, vector<1x1xf32>
    tpu.vector_store %arg5[%c0_12, %c0_13], %37 {strides = array<i32>} : memref<1x1xf32, #tpu.memory_space<vmem>>, vector<1x1xf32>,
    %c0_14 = arith.constant 0 : index
    %c0_15 = arith.constant 0 : index
    %39 = vector.load %arg6[%c0_14, %c0_15] : memref<1x1xf32, #tpu.memory_space<vmem>>, vector<1x1xf32>
    %40 = arith.extui %15 : vector<16x1xi1> to vector<16x1xi32>
    %41 = arith.sitofp %40 : vector<16x1xi32> to vector<16x1xf32>
    %cst_16 = arith.constant dense<0.000000e+00> : vector<1xf32>
    %42 = vector.multi_reduction <add>, %41, %cst_16 [0] : vector<16x1xf32> to vector<1xf32>
    %43 = vector.shape_cast %42 : vector<1xf32> to vector<1x1xf32>
    %44 = arith.addf %39, %43 : vector<1x1xf32>
    %c0_17 = arith.constant 0 : index
    %c0_18 = arith.constant 0 : index
    %45 = vector.load %arg6[%c0_17, %c0_18] : memref<1x1xf32, #tpu.memory_space<vmem>>, vector<1x1xf32>
    tpu.vector_store %arg6[%c0_17, %c0_18], %44 {strides = array<i32>} : memref<1x1xf32, #tpu.memory_space<vmem>>, vector<1x1xf32>,
    %c0_i32_19 = arith.constant 0 : i32
    %46 = arith.cmpi eq, %arg1, %c0_i32_19 : i32
    %47 = arith.extui %46 : i1 to i32
    %c0_i32_20 = arith.constant 0 : i32
    %48 = arith.cmpi ne, %47, %c0_i32_20 : i32
    scf.if %48 {
      %49 = tpu.iota {dimensions = array<i32: 1>} : vector<8x128xi32>
      %50 = tpu.iota {dimensions = array<i32: 0>} : vector<8x128xi32>
      %c0_i32_21 = arith.constant 0 : i32
      %51 = vector.broadcast %c0_i32_21 : i32 to vector<8x128xi32>
      %52 = arith.cmpi eq, %50, %51 : vector<8x128xi32>
      %c0_i32_22 = arith.constant 0 : i32
      %53 = vector.broadcast %c0_i32_22 : i32 to vector<8x128xi32>
      %54 = arith.cmpi eq, %49, %53 : vector<8x128xi32>
      %55 = arith.andi %52, %54 : vector<8x128xi1>
      %c0_23 = arith.constant 0 : index
      %c0_24 = arith.constant 0 : index
      %56 = vector.load %arg5[%c0_23, %c0_24] : memref<1x1xf32, #tpu.memory_space<vmem>>, vector<1x1xf32>
      %57 = vector.extract %56[0, 0] : f32 from vector<1x1xf32>
      %c0_i32_25 = arith.constant 0 : i32
      %58 = vector.broadcast %c0_i32_25 : i32 to vector<8x128xi32>
      %59 = arith.cmpi eq, %50, %58 : vector<8x128xi32>
      %c1_i32_26 = arith.constant 1 : i32
      %60 = vector.broadcast %c1_i32_26 : i32 to vector<8x128xi32>
      %61 = arith.cmpi eq, %49, %60 : vector<8x128xi32>
      %62 = arith.andi %59, %61 : vector<8x128xi1>
      %c0_27 = arith.constant 0 : index
      %c0_28 = arith.constant 0 : index
      %63 = vector.load %arg6[%c0_27, %c0_28] : memref<1x1xf32, #tpu.memory_space<vmem>>, vector<1x1xf32>
      %64 = vector.extract %63[0, 0] : f32 from vector<1x1xf32>
      %cst_29 = arith.constant 0.000000e+00 : f32
      %65 = vector.broadcast %64 : f32 to vector<8x128xf32>
      %66 = vector.broadcast %cst_29 : f32 to vector<8x128xf32>
      %67 = arith.select %62, %65, %66 : vector<8x128xi1>, vector<8x128xf32>
      %68 = vector.broadcast %57 : f32 to vector<8x128xf32>
      %69 = arith.select %55, %68, %67 : vector<8x128xi1>, vector<8x128xf32>
      %c0_30 = arith.constant 0 : index
      %c0_31 = arith.constant 0 : index
      %70 = vector.load %arg4[%c0_30, %c0_31] : memref<8x128xf32, #tpu.memory_space<vmem>>, vector<8x128xf32>
      tpu.vector_store %arg4[%c0_30, %c0_31], %69 {strides = array<i32>} : memref<8x128xf32, #tpu.memory_space<vmem>>, vector<8x128xf32>,
    } else {
    }
    return
  }
  func.func @transform_0(%arg0: i32, %arg1: i32) -> (i32, i32) {
    %c1_i32 = arith.constant 1 : i32
    %0 = arith.muli %arg0, %c1_i32 : i32
    %1 = arith.addi %0, %arg1 : i32
    %c0_i32 = arith.constant 0 : i32
    %2 = arith.minsi %1, %c0_i32 : i32
    %c0_i32_0 = arith.constant 0 : i32
    %c0_i32_1 = arith.constant 0 : i32
    return %2, %c0_i32_0 : i32, i32
  }
  func.func @transform_1(%arg0: i32, %arg1: i32) -> (i32, i32) {
    %c1_i32 = arith.constant 1 : i32
    %0 = arith.muli %arg0, %c1_i32 : i32
    %1 = arith.addi %0, %arg1 : i32
    %c0_i32 = arith.constant 0 : i32
    %c0_i32_0 = arith.constant 0 : i32
    return %1, %c0_i32 : i32, i32
  }
  func.func @transform_2(%arg0: i32, %arg1: i32) -> (i32, i32) {
    %c0_i32 = arith.constant 0 : i32
    %c0_i32_0 = arith.constant 0 : i32
    return %arg0, %c0_i32 : i32, i32
  }
}

</mosaic_0001>

<bundles_post_ra>
// kernel: tpu_custom_call.1
= control target key start
LH: loop header
LB: loop body
LE: loop exit
PB: predicated region body
PF: predicated region fallthrough
CT: control target
= control target key end

     0   :  { %vm70_vm0 = vcmask 0   ;;  %v245_v2 = vmov 0   ;;  %s305_s0 = inlined_call_operand.vmem [shape: f32[16,128], index: 0, kind: input, shape index: {}]   ;;  %s306_s1 = inlined_call_operand.vmem [shape: s32[16,1], index: 1, kind: input, shape index: {}]   ;;  %s307_s2 = inlined_call_operand.hbm [shape: f32[8,128], index: 2, kind: output, shape index: {}]  }
   0x1   :  { %v73_v0 = vld [vmem:[%s305_s0] sm:$0xff]  ;;  %211 = vset.pattern.permute.xlu1 %v245_v2  ;;  %v76_v3 = vld [vmem:[%s306_s1 + $0x8] sm:$0xff] }
   0x2   :  { %v269_v1 = vld [vmem:[%s306_s1] sm:$0xff]  ;;  %91 = vmax.xlane.f32.xlu0 %v73_v0 }
   0x3   :  { %vm85_vm1 = vcmp.ne.s32.totalorder %v269_v1, 4294967196 }
   0x4   :  { %7 = vsyncpa [#allocation5], 0  ;;  %v74_v4 = vld [vmem:[%s305_s0 + $0x8] sm:$0xff]  ;;  %vm130_vm2 = vcmask 7168   ;;  %108 = vperm.xlu1 %211, %v269_v1   ;;  %v246_v5 = vmov 0.0   ;;  %vm86_vm3 = vcmp.ne.s32.totalorder %v76_v3, 4294967196  ;;  %212 = vset.pattern.permute.xlu0 %v245_v2  ;;  %v79_v25 = vlaneseq }
   0x5   :  { %71 = vst.msk [vmem:[#allocation2] sm:$0x1] %vm70_vm0, %v246_v5  ;;  %72 = vst.msk [vmem:[#allocation3] sm:$0x1] %vm70_vm0, %v246_v5  ;;  %v202_v6 = vsel %vm85_vm1, 1.0, %v246_v5  ;;  %v203_v8 = vsel %vm86_vm3, 1.0, %v246_v5 }
   0x6   :  { %v148_v7 = vsel %vm130_vm2, %v202_v6, 0.0  ;;  %v149_v9 = vsel %vm130_vm2, %v203_v8, 0.0  ;;  %93 = vmax.xlane.f32.xlu0 %v74_v4  ;;  %v106_v27 = vand.u32 127, %v79_v25  ;;  %v80_v58 = vshrl.u32 %v79_v25, 7  ;;  %s247_s1 = smov [#allocation4]  }
   0x7   :  { %v150_v10 = vadd.f32 %v149_v9, %v148_v7  ;;  %s182_s17 = sshll.u32 %s247_s1, 4  ;;  %s183_s17 = int_to_ptr.vmem [resolvable:$true] %s182_s17 }
   0x8   :  { %111 = vperm.xlu1 %211, %v76_v3   ;;  %vm162_vm6 = vcmp.eq.s32.totalorder %v80_v58, 0  ;;  %vm167_vm7 = vcmp.eq.s32.totalorder %v106_v27, 1  ;;  %vm163_vm8 = vcmp.eq.s32.totalorder %v106_v27, 0  ;;  %s221_s19 = scalar_lea.vmem %s183_s17, 128  ;;  %p226_p1 = scmp.lt.s32.totalorder %s183_s17, %s183_s17 }
   0x9   :  { %v151_v11 = vrot.slane %v150_v10, 4  ;;  %vm168_vm9 = vmand %vm162_vm6, %vm167_vm7  ;;  %p222_p0 = scmp.ne.s32.totalorder %s183_s17, %s221_s19  ;;  %p227_p2 = scmp.lt.s32.totalorder %s221_s19, %s221_s19 }
   0xa   :  { %vm164_vm10 = vmand %vm162_vm6, %vm163_vm8 }
   0xb   :  { %v152_v12 = vadd.f32 %v151_v11, %v150_v10  ;;  %p228_p3 = por %p227_p2, %p226_p1 }
   0xc   :  { %v143_v16 = vld [vmem:[#allocation3] sm:$0x1]  ;;  %v129_v53 = vld [vmem:[#allocation2] sm:$0x1] }
   0xd   :  { %v153_v13 = vrot.slane %v152_v12, 2  ;;  %p229_p4 = pnand %p228_p3, %p222_p0 }
   0xf   :  { %v154_v14 = vadd.f32 %v153_v13, %v152_v12 }
  0x11   :  { %v155_v15 = vrot.slane %v154_v14, 1 }
  0x13   :  { %v156_v17 = vadd.f32 %v155_v15, %v154_v14 }
  0x15   :  { %v157_v18 = vadd.f32 %v156_v17, %v143_v16 }
  0x17   :  { %158 = vst.msk [vmem:[#allocation3] sm:$0x1] %vm70_vm0, %v157_v18 }
  0x1e   :  { %v169_v56 = vld [vmem:[#allocation3] sm:$0x1] }
  0x83   :  { %v109_v26 = vpop.permute.xlu1 %108 }
  0x84   :  { %vm113_vm4 = vcmp.eq.s32.totalorder %v106_v27, %v109_v26 }
  0x87   :  { %v112_v29 = vpop.permute.xlu1 %111 }
  0x88   :  { %vm114_vm5 = vcmp.eq.s32.totalorder %v106_v27, %v112_v29 }
  0x8f   :  { %v92_v19 = vpop.xlane.xlu0 %91 }
  0x90   :  { %v95_v20 = vsub.f32 %v73_v0, %v92_v19 }
  0x92   :  { %v97_v21 = vmul.f32 1.442695, %v95_v20  ;;  %v115_v31 = vsel %vm113_vm4, %v95_v20, 0.0 }
  0x93   :  { %v94_v22 = vpop.xlane.xlu0 %93 }
  0x94   :  { %213 = vpow2.f32 %v97_v21  ;;  %v96_v23 = vsub.f32 %v74_v4, %v94_v22 }
  0x96   :  { %v99_v24 = vmul.f32 1.442695, %v96_v23  ;;  %v116_v32 = vsel %vm114_vm5, %v96_v23, 0.0 }
  0x98   :  { %215 = vpow2.f32 %v99_v24 }
  0x9e   :  { %v214_v28 = vpop.eup %213 }
  0x9f   :  { %101 = vadd.xlane.f32.xlu0 %v214_v28 }
  0xa2   :  { %v216_v30 = vpop.eup %215 }
  0xa3   :  { %117 = vadd.xlane.f32.xlu0 %v115_v31  ;;  %103 = vadd.xlane.f32.xlu1 %v216_v30 }
  0xa7   :  { %119 = vadd.xlane.f32.xlu0 %v116_v32 }
 0x12c   :  { %v102_v33 = vpop.xlane.xlu0 %101 }
 0x12d   :  { %217 = vlog2.f32 %v102_v33 }
 0x130   :  { %v104_v34 = vpop.xlane.xlu1 %103  ;;  %v118_v36 = vpop.xlane.xlu0 %117 }
 0x131   :  { %219 = vlog2.f32 %v104_v34 }
 0x134   :  { %v120_v41 = vpop.xlane.xlu0 %119 }
 0x137   :  { %v218_v35 = vpop.eup %217 }
 0x138   :  { %v122_v37 = vmul.f32 0.6931472, %v218_v35 }
 0x13a   :  { %v125_v38 = vsub.f32 %v122_v37, %v118_v36 }
 0x13b   :  { %v220_v39 = vpop.eup %219 }
 0x13c   :  { %v124_v40 = vmul.f32 0.6931472, %v220_v39  ;;  %v127_v42 = vsel %vm85_vm1, %v125_v38, 0.0 }
 0x13d   :  { %v131_v45 = vsel %vm130_vm2, %v127_v42, 0.0 }
 0x13e   :  { %v126_v43 = vsub.f32 %v124_v40, %v120_v41 }
 0x140   :  { %v128_v44 = vsel %vm86_vm3, %v126_v43, 0.0 }
 0x141   :  { %v132_v46 = vsel %vm130_vm2, %v128_v44, 0.0 }
 0x142   :  { %v133_v47 = vadd.f32 %v132_v46, %v131_v45 }
 0x144   :  { %v134_v48 = vrot.slane %v133_v47, 4 }
 0x146   :  { %v135_v49 = vadd.f32 %v134_v48, %v133_v47 }
 0x148   :  { %v136_v50 = vrot.slane %v135_v49, 2 }
 0x14a   :  { %v137_v51 = vadd.f32 %v136_v50, %v135_v49 }
 0x14c   :  { %v138_v52 = vrot.slane %v137_v51, 1 }
 0x14e   :  { %v139_v54 = vadd.f32 %v138_v52, %v137_v51 }
 0x150   :  { %v140_v55 = vadd.f32 %v139_v54, %v129_v53 }
 0x152   :  { %142 = vst.msk [vmem:[#allocation2] sm:$0x1] %vm70_vm0, %v140_v55 }
 0x159   :  { %v165_v57 = vld [vmem:[#allocation2] sm:$0x1] }
 0x15a   :  { %204 = vpush %v165_v57 }
 0x15b   :  { %206 = vpush %v169_v56 }
 0x18b   :  { %s205_s0 = spop %204 }
 0x18c   :  { %v173_v59 = vstv %s205_s0  ;;  %s207_s18 = spop %206 }
 0x18d   :  { %v171_v60 = vstv %s207_s18 }
 0x18e   :  { %v172_v61 = vsel %vm168_vm9, %v171_v60, 0.0 }
 0x18f   :  { %v174_v62 = vsel %vm164_vm10, %v173_v59, %v172_v61 }
 0x190   :  { %175 = vst [vmem:[#allocation4] sm:$0xff] %v174_v62 }
 0x191   :  { %232 = shalt.err (!%p229_p4)
}
 0x192   :  { %s233_s22 = scalar_lea.hbm %s307_s2, 128 }
 0x193   :  { %p234_p5 = scmp.ne.s32.totalorder %s307_s2, %s233_s22  ;;  %p237_p6 = scmp.lt.u32.totalorder %s233_s22, %s307_s2 }
 0x195   :  { %p239_p7 = pnand %p237_p6, %p234_p5 }
 0x197   :  { %242 = shalt.err (!%p239_p7)
}
 0x198   :  { %185 = dma.vmem_to_hbm [thread:$0]  %s183_s17, 128, %s307_s2, [#allocation5]  }
 0x199   :  { %243 = dma.done.wait [#allocation5], 128  }
 0x19a   :  { %244 = vsyncadd [#allocation5], 4294967168 }
 0x19b   :  { %189 = vsyncpa [#allocation5], 1 }

</bundles_post_ra>
